<compile_context>
chip_gen: v6e
topology: v6e:2x2x1
jax: 0.10.0
libtpu: 0.0.40
codegen_flags: <defaults>
</compile_context>

<pallas_src>
import functools

import numpy as np
import jax
import jax.numpy as jnp
from jax import lax
from jax.experimental import pallas as pl
from jax.experimental.pallas import tpu as pltpu

MATMUL_DTYPE = jnp.bfloat16    # MXU-native input dtype; accumulation stays f32
OUT_LANE_PAD = 128             # lane-dense (unmasked) output stores


def _round_up(x, m):
    return (x + m - 1) // m * m


# ----------------------------------------------------------------------------
# Fused kernel: whole forward pass for one batch tile (weights VMEM-resident)
# ----------------------------------------------------------------------------
def fused_forward_kernel(ximg_ref, x2_ref, m_ref, bc_ref,
                         w1_ref, b1_ref,
                         w2_ref, b2_ref,
                         w3_ref, b3_ref,
                         w4_ref, b4_ref,
                         out_ref, *, h0, num_offsets):
    """Entire Base.forward for a (TILE_B, ...) batch tile.

    ximg_ref: (TB, H*W)  f32       flattened conv input (C_in == 1)
    m_ref:    (H*W, num_offsets*H_0) bf16   conv folded into ONE matmul (all pool
                                            offsets concatenated along lanes)
    bc_ref:   (1, H_0) f32         conv bias expanded into flatten order
    w1_ref:   (c_input, H_0) bf16, b1_ref: (1, H_0) f32
    w2_ref:   (H_1, H_2)     bf16, b2_ref: (1, H_2) f32   (H_1 = 2*H_0, cat folded)
    w3_ref:   (H_2, H_3)     bf16, b3_ref: (1, H_3) f32
    w4_ref:   (H_3, 128)     bf16, b4_ref: (1, 128) f32   (zero-padded lanes)
    out_ref:  (TB, 128) f32
    """
    # conv + pool (+ flatten) : ONE MXU matmul, then max over pool-offset slabs.
    ximg = ximg_ref[...].astype(m_ref.dtype)
    z = jnp.dot(ximg, m_ref[...], preferred_element_type=jnp.float32)
    x1f = z[:, 0:h0]
    for q in range(1, num_offsets):                     # static, tiny (= ph*pw - 1)
        x1f = jnp.maximum(x1f, z[:, q * h0:(q + 1) * h0])
    # bias is identical per slab -> add once after the max; relu(max) == max(relu)
    x1f = jnp.maximum(x1f + bc_ref[...], 0.0)

    # fc1 + relu on the ECFP branch
    x2f = jnp.maximum(
        jnp.dot(x2_ref[...].astype(w1_ref.dtype), w1_ref[...],
                preferred_element_type=jnp.float32) + b1_ref[...], 0.0)

    # dropout: inference-mode identity (see TODO at top of file)

    # torch.cat + fc2 + relu fused into one K=H_1 matmul
    xcat = jnp.concatenate([x1f, x2f], axis=1).astype(w2_ref.dtype)
    h = jnp.maximum(
        jnp.dot(xcat, w2_ref[...], preferred_element_type=jnp.float32)
        + b2_ref[...], 0.0)
    # fc3 + relu
    h = jnp.maximum(
        jnp.dot(h.astype(w3_ref.dtype), w3_ref[...],
                preferred_element_type=jnp.float32) + b3_ref[...], 0.0)
    # fc4 + relu (lane-dense padded store; extra lanes are zeros)
    out_ref[...] = jnp.maximum(
        jnp.dot(h.astype(w4_ref.dtype), w4_ref[...],
                preferred_element_type=jnp.float32) + b4_ref[...], 0.0)


# ----------------------------------------------------------------------------
# One-time parameter preprocessing (done OUTSIDE the per-call forward)
# ----------------------------------------------------------------------------
def prepare_params(params, cfg):
    """Fold conv+pool+flatten into one matmul matrix; pre-transpose / pad FC weights."""
    C, kh, kw = cfg["C"], cfg["kh"], cfg["kw"]
    H, W = cfg["H"], cfg["W"]
    Hp, Wp, s = cfg["Hp"], cfg["Wp"], cfg["stride"]
    ph, pw = cfg["ph"], cfg["pw"]
    H_0, H_3 = cfg["H_0"], cfg["H_3"]
    out_size = cfg["out_size"]

    P = ph * pw
    w_np = np.asarray(params["w_conv"], np.float32)           # (C, 1, kh, kw)
    # One slab of H_0 columns per pool-window offset, concatenated along lanes.
    mats = np.zeros((H * W, P * H_0), np.float32)
    for qi in range(ph):
        for qj in range(pw):
            q = qi * pw + qj
            for c in range(C):
                for hp in range(Hp):
                    for wp in range(Wp):
                        col = q * H_0 + c * Hp * Wp + hp * Wp + wp   # PyTorch flatten order
                        for pi in range(kh):
                            for pj in range(kw):
                                h = hp * s + qi + pi
                                w = wp * s + qj + pj
                                mats[h * W + w, col] += w_np[c, 0, pi, pj]
    bc = np.repeat(np.asarray(params["b_conv"], np.float32), Hp * Wp)[None, :]

    out_pad = _round_up(max(out_size, 1), OUT_LANE_PAD)
    W4t_pad = np.zeros((H_3, out_pad), np.float32)
    W4t_pad[:, :out_size] = np.asarray(params["W4"], np.float32).T
    b4_pad = np.zeros((1, out_pad), np.float32)
    b4_pad[0, :out_size] = np.asarray(params["b4"], np.float32)

    return {
        "M": jnp.asarray(mats, MATMUL_DTYPE),                 # (H*W, P*H_0)
        "bc": jnp.asarray(bc, jnp.float32),                   # (1, H_0)
        "W1t": jnp.asarray(params["W1"], jnp.float32).T.astype(MATMUL_DTYPE),
        "b1": jnp.asarray(params["b1"], jnp.float32).reshape(1, -1),
        "W2t": jnp.asarray(params["W2"], jnp.float32).T.astype(MATMUL_DTYPE),  # (H_1, H_2)
        "b2": jnp.asarray(params["b2"], jnp.float32).reshape(1, -1),
        "W3t": jnp.asarray(params["W3"], jnp.float32).T.astype(MATMUL_DTYPE),
        "b3": jnp.asarray(params["b3"], jnp.float32).reshape(1, -1),
        "W4t": jnp.asarray(W4t_pad, MATMUL_DTYPE),            # (H_3, 128)
        "b4": jnp.asarray(b4_pad, jnp.float32),                # (1, 128)
    }


# ----------------------------------------------------------------------------
# Forward pass (one batch-tiled pallas_call) and pure-JAX reference
# ----------------------------------------------------------------------------
def pallas_forward(prepared, x1, x2, cfg):
    B = cfg["B"]
    H, W, c_input = cfg["H"], cfg["W"], cfg["c_input"]
    H_0 = cfg["H_0"]
    P = cfg["ph"] * cfg["pw"]
    out_size = cfg["out_size"]
    hw = H * W
    out_pad = prepared["W4t"].shape[1]

    # Batch tile: multiple of 8 sublanes; weights stay resident across grid steps.
    tile_b = min(512, _round_up(B, 8))
    b_pad = _round_up(B, tile_b)

    ximg = x1.reshape(B, hw)                      # C_in == 1; free reshape
    x2_2d = x2.reshape(B, c_input)
    if b_pad != B:
        ximg = jnp.pad(ximg, ((0, b_pad - B), (0, 0)))
        x2_2d = jnp.pad(x2_2d, ((0, b_pad - B), (0, 0)))

    kernel = functools.partial(fused_forward_kernel, h0=H_0, num_offsets=P)
    row = lambda i: (i, 0)       # streamed activations / output
    const = lambda i: (0, 0)     # VMEM-resident weights & biases

    out = pl.pallas_call(
        kernel,
        out_shape=jax.ShapeDtypeStruct((b_pad, out_pad), jnp.float32),
        grid_spec=pltpu.PrefetchScalarGridSpec(
            num_scalar_prefetch=0,
            grid=(b_pad // tile_b,),
            in_specs=[
                pl.BlockSpec((tile_b, hw), row),
                pl.BlockSpec((tile_b, c_input), row),
                pl.BlockSpec(prepared["M"].shape, const),
                pl.BlockSpec(prepared["bc"].shape, const),
                pl.BlockSpec(prepared["W1t"].shape, const),
                pl.BlockSpec(prepared["b1"].shape, const),
                pl.BlockSpec(prepared["W2t"].shape, const),
                pl.BlockSpec(prepared["b2"].shape, const),
                pl.BlockSpec(prepared["W3t"].shape, const),
                pl.BlockSpec(prepared["b3"].shape, const),
                pl.BlockSpec(prepared["W4t"].shape, const),
                pl.BlockSpec(prepared["b4"].shape, const),
            ],
            out_specs=pl.BlockSpec((tile_b, out_pad), row),
        ),
        compiler_params=pltpu.CompilerParams(
            dimension_semantics=("parallel",),     # 2 TCs on v7x share the batch
            vmem_limit_bytes=32 * 1024 * 1024,     # explicit; raise if M grows
        ),
    )(ximg, x2_2d,
      prepared["M"], prepared["bc"],
      prepared["W1t"], prepared["b1"],
      prepared["W2t"], prepared["b2"],
      prepared["W3t"], prepared["b3"],
      prepared["W4t"], prepared["b4"])

    return out[:B, :out_size]


def reference_forward(params, x1, x2, cfg):
    B, out_size = cfg["B"], cfg["out_size"]
    hp = lax.Precision.HIGHEST
    out = lax.conv_general_dilated(
        x1, params["w_conv"], window_strides=(1, 1), padding="VALID",
        dimension_numbers=("NCHW", "OIHW", "NCHW"), precision=hp)
    out = jnp.maximum(out + params["b_conv"].reshape(1, -1, 1, 1), 0.0)
    out = lax.reduce_window(out, -jnp.inf, lax.max,
                            (1, 1, cfg["ph"], cfg["pw"]),
                            (1, 1, cfg["stride"], cfg["stride"]), "VALID")
    x1f = out.reshape(B, 1, cfg["H_0"])
    x2f = jnp.maximum(jnp.dot(x2, params["W1"].T, precision=hp) + params["b1"], 0.0)
    x = jnp.concatenate([x1f, x2f], axis=2)
    x = jnp.maximum(jnp.dot(x, params["W2"].T, precision=hp) + params["b2"], 0.0)
    x = jnp.maximum(jnp.dot(x, params["W3"].T, precision=hp) + params["b3"], 0.0)
    x = jnp.maximum(jnp.dot(x, params["W4"].T, precision=hp) + params["b4"], 0.0)
    return x.reshape(B, out_size)


# ----------------------------------------------------------------------------
if __name__ == "__main__":
    # Small instance consistent with the module's constraints:
    #   H_1 = 2*H_0,  num_kernel*Hp*Wp = H_0
    cfg = dict(B=2, c_input=32, kh=2, kw=3, C=4, ph=1, pw=2, stride=2,
               H=5, W=10, H_0=32, H_1=64, H_2=32, H_3=16, out_size=2)
    cfg["Ho"] = cfg["H"] - cfg["kh"] + 1                      # 4
    cfg["Wo"] = cfg["W"] - cfg["kw"] + 1                      # 8
    cfg["Hp"] = (cfg["Ho"] - cfg["ph"]) // cfg["stride"] + 1  # 2
    cfg["Wp"] = (cfg["Wo"] - cfg["pw"]) // cfg["stride"] + 1  # 4
    assert cfg["C"] * cfg["Hp"] * cfg["Wp"] == cfg["H_0"]
    assert 2 * cfg["H_0"] == cfg["H_1"]

    key = jax.random.PRNGKey(0)
    ks = jax.random.split(key, 12)
    params = {
        "w_conv": 0.1 * jax.random.normal(ks[0], (cfg["C"], 1, cfg["kh"], cfg["kw"]), jnp.float32),
        "b_conv": 0.1 * jax.random.normal(ks[1], (cfg["C"],), jnp.float32),
        "W1": 0.1 * jax.random.normal(ks[2], (cfg["H_0"], cfg["c_input"]), jnp.float32),
        "b1": 0.1 * jax.random.normal(ks[3], (cfg["H_0"],), jnp.float32),
        "W2": 0.1 * jax.random.normal(ks[4], (cfg["H_2"], cfg["H_1"]), jnp.float32),
        "b2": 0.1 * jax.random.normal(ks[5], (cfg["H_2"],), jnp.float32),
        "W3": 0.1 * jax.random.normal(ks[6], (cfg["H_3"], cfg["H_2"]), jnp.float32),
        "b3": 0.1 * jax.random.normal(ks[7], (cfg["H_3"],), jnp.float32),
        "W4": 0.1 * jax.random.normal(ks[8], (cfg["out_size"], cfg["H_3"]), jnp.float32),
        "b4": 0.1 * jax.random.normal(ks[9], (cfg["out_size"],), jnp.float32),
    }
    x1 = jax.random.normal(ks[10], (cfg["B"], 1, cfg["H"], cfg["W"]), jnp.float32)
    x2 = jax.random.normal(ks[11], (cfg["B"], 1, cfg["c_input"]), jnp.float32)

    prepared = prepare_params(params, cfg)               # one-time setup
    fwd = jax.jit(functools.partial(pallas_forward, cfg=cfg))

    out = jax.block_until_ready(fwd(prepared, x1, x2))
    ref = jax.block_until_ready(reference_forward(params, x1, x2, cfg))

    assert out.shape == (cfg["B"], cfg["out_size"])
    assert np.allclose(np.asarray(out), np.asarray(ref), rtol=1e-2, atol=1e-2), (
        f"mismatch: max err = {np.max(np.abs(np.asarray(out) - np.asarray(ref)))}")

    print("KERNEL_OK")
</pallas_src>

<mosaic_0001>
module attributes {stable_mosaic.version = 11 : i64} {
  func.func @fused_forward_kernel(%arg0: i32, %arg1: memref<8x50xf32, #tpu.memory_space<vmem>>, %arg2: memref<8x32xf32, #tpu.memory_space<vmem>>, %arg3: memref<50x64xbf16, #tpu.memory_space<vmem>>, %arg4: memref<1x32xf32, #tpu.memory_space<vmem>>, %arg5: memref<32x32xbf16, #tpu.memory_space<vmem>>, %arg6: memref<1x32xf32, #tpu.memory_space<vmem>>, %arg7: memref<64x32xbf16, #tpu.memory_space<vmem>>, %arg8: memref<1x32xf32, #tpu.memory_space<vmem>>, %arg9: memref<32x16xbf16, #tpu.memory_space<vmem>>, %arg10: memref<1x16xf32, #tpu.memory_space<vmem>>, %arg11: memref<16x128xbf16, #tpu.memory_space<vmem>>, %arg12: memref<1x128xf32, #tpu.memory_space<vmem>>, %arg13: memref<8x128xf32, #tpu.memory_space<vmem>>) attributes {dimension_semantics = [#tpu.dimension_semantics<parallel>], iteration_bounds = array<i64: 1>, scalar_prefetch = 0 : i64, scratch_operands = 0 : i64, tpu.core_type = #tpu.core_type<tc>, window_params = [{transform_indices = @transform_0, window_bounds = array<i64: 8, 50>}, {transform_indices = @transform_1, window_bounds = array<i64: 8, 32>}, {pipeline_mode = #tpu.pipeline_mode<synchronous>, transform_indices = @transform_2, window_bounds = array<i64: 50, 64>}, {pipeline_mode = #tpu.pipeline_mode<synchronous>, transform_indices = @transform_3, window_bounds = array<i64: 1, 32>}, {pipeline_mode = #tpu.pipeline_mode<synchronous>, transform_indices = @transform_4, window_bounds = array<i64: 32, 32>}, {pipeline_mode = #tpu.pipeline_mode<synchronous>, transform_indices = @transform_5, window_bounds = array<i64: 1, 32>}, {pipeline_mode = #tpu.pipeline_mode<synchronous>, transform_indices = @transform_6, window_bounds = array<i64: 64, 32>}, {pipeline_mode = #tpu.pipeline_mode<synchronous>, transform_indices = @transform_7, window_bounds = array<i64: 1, 32>}, {pipeline_mode = #tpu.pipeline_mode<synchronous>, transform_indices = @transform_8, window_bounds = array<i64: 32, 16>}, {pipeline_mode = #tpu.pipeline_mode<synchronous>, transform_indices = @transform_9, window_bounds = array<i64: 1, 16>}, {pipeline_mode = #tpu.pipeline_mode<synchronous>, transform_indices = @transform_10, window_bounds = array<i64: 16, 128>}, {pipeline_mode = #tpu.pipeline_mode<synchronous>, transform_indices = @transform_11, window_bounds = array<i64: 1, 128>}, {transform_indices = @transform_12, window_bounds = array<i64: 8, 128>}]} {
    %c0 = arith.constant 0 : index
    %c0_0 = arith.constant 0 : index
    %0 = vector.load %arg1[%c0, %c0_0] : memref<8x50xf32, #tpu.memory_space<vmem>>, vector<8x50xf32>
    %1 = arith.truncf %0 : vector<8x50xf32> to vector<8x50xbf16>
    %c0_1 = arith.constant 0 : index
    %c0_2 = arith.constant 0 : index
    %2 = vector.load %arg3[%c0_1, %c0_2] : memref<50x64xbf16, #tpu.memory_space<vmem>>, vector<50x64xbf16>
    %cst = arith.constant dense<0.000000e+00> : vector<8x64xf32>
    %3 = tpu.matmul %1, %2, %cst {dimension_numbers = #tpu.dot_dimension_numbers<[1], [0], [0], [1], [0, 0, 1, 1], [], []>} : vector<8x50xbf16>, vector<50x64xbf16>, vector<8x64xf32> -> vector<8x64xf32>
    %4 = vector.extract_strided_slice %3 {offsets = [0, 0], sizes = [8, 32], strides = [1, 1]} : vector<8x64xf32> to vector<8x32xf32>
    %5 = vector.extract_strided_slice %3 {offsets = [0, 32], sizes = [8, 32], strides = [1, 1]} : vector<8x64xf32> to vector<8x32xf32>
    %6 = arith.maximumf %4, %5 : vector<8x32xf32>
    %c0_3 = arith.constant 0 : index
    %c0_4 = arith.constant 0 : index
    %7 = vector.load %arg4[%c0_3, %c0_4] : memref<1x32xf32, #tpu.memory_space<vmem>>, vector<1x32xf32>
    %8 = vector.broadcast %7 : vector<1x32xf32> to vector<8x32xf32>
    %9 = arith.addf %6, %8 : vector<8x32xf32>
    %cst_5 = arith.constant 0.000000e+00 : f32
    %10 = vector.broadcast %cst_5 : f32 to vector<8x32xf32>
    %11 = arith.maximumf %9, %10 : vector<8x32xf32>
    %c0_6 = arith.constant 0 : index
    %c0_7 = arith.constant 0 : index
    %12 = vector.load %arg2[%c0_6, %c0_7] : memref<8x32xf32, #tpu.memory_space<vmem>>, vector<8x32xf32>
    %13 = arith.truncf %12 : vector<8x32xf32> to vector<8x32xbf16>
    %c0_8 = arith.constant 0 : index
    %c0_9 = arith.constant 0 : index
    %14 = vector.load %arg5[%c0_8, %c0_9] : memref<32x32xbf16, #tpu.memory_space<vmem>>, vector<32x32xbf16>
    %cst_10 = arith.constant dense<0.000000e+00> : vector<8x32xf32>
    %15 = tpu.matmul %13, %14, %cst_10 {dimension_numbers = #tpu.dot_dimension_numbers<[1], [0], [0], [1], [0, 0, 1, 1], [], []>} : vector<8x32xbf16>, vector<32x32xbf16>, vector<8x32xf32> -> vector<8x32xf32>
    %c0_11 = arith.constant 0 : index
    %c0_12 = arith.constant 0 : index
    %16 = vector.load %arg6[%c0_11, %c0_12] : memref<1x32xf32, #tpu.memory_space<vmem>>, vector<1x32xf32>
    %17 = vector.broadcast %16 : vector<1x32xf32> to vector<8x32xf32>
    %18 = arith.addf %15, %17 : vector<8x32xf32>
    %cst_13 = arith.constant 0.000000e+00 : f32
    %19 = vector.broadcast %cst_13 : f32 to vector<8x32xf32>
    %20 = arith.maximumf %18, %19 : vector<8x32xf32>
    %21 = tpu.concatenate %11, %20 in 1 : vector<8x32xf32>, vector<8x32xf32> -> vector<8x64xf32>
    %22 = arith.truncf %21 : vector<8x64xf32> to vector<8x64xbf16>
    %c0_14 = arith.constant 0 : index
    %c0_15 = arith.constant 0 : index
    %23 = vector.load %arg7[%c0_14, %c0_15] : memref<64x32xbf16, #tpu.memory_space<vmem>>, vector<64x32xbf16>
    %cst_16 = arith.constant dense<0.000000e+00> : vector<8x32xf32>
    %24 = tpu.matmul %22, %23, %cst_16 {dimension_numbers = #tpu.dot_dimension_numbers<[1], [0], [0], [1], [0, 0, 1, 1], [], []>} : vector<8x64xbf16>, vector<64x32xbf16>, vector<8x32xf32> -> vector<8x32xf32>
    %c0_17 = arith.constant 0 : index
    %c0_18 = arith.constant 0 : index
    %25 = vector.load %arg8[%c0_17, %c0_18] : memref<1x32xf32, #tpu.memory_space<vmem>>, vector<1x32xf32>
    %26 = vector.broadcast %25 : vector<1x32xf32> to vector<8x32xf32>
    %27 = arith.addf %24, %26 : vector<8x32xf32>
    %cst_19 = arith.constant 0.000000e+00 : f32
    %28 = vector.broadcast %cst_19 : f32 to vector<8x32xf32>
    %29 = arith.maximumf %27, %28 : vector<8x32xf32>
    %30 = arith.truncf %29 : vector<8x32xf32> to vector<8x32xbf16>
    %c0_20 = arith.constant 0 : index
    %c0_21 = arith.constant 0 : index
    %31 = vector.load %arg9[%c0_20, %c0_21] : memref<32x16xbf16, #tpu.memory_space<vmem>>, vector<32x16xbf16>
    %cst_22 = arith.constant dense<0.000000e+00> : vector<8x16xf32>
    %32 = tpu.matmul %30, %31, %cst_22 {dimension_numbers = #tpu.dot_dimension_numbers<[1], [0], [0], [1], [0, 0, 1, 1], [], []>} : vector<8x32xbf16>, vector<32x16xbf16>, vector<8x16xf32> -> vector<8x16xf32>
    %c0_23 = arith.constant 0 : index
    %c0_24 = arith.constant 0 : index
    %33 = vector.load %arg10[%c0_23, %c0_24] : memref<1x16xf32, #tpu.memory_space<vmem>>, vector<1x16xf32>
    %34 = vector.broadcast %33 : vector<1x16xf32> to vector<8x16xf32>
    %35 = arith.addf %32, %34 : vector<8x16xf32>
    %cst_25 = arith.constant 0.000000e+00 : f32
    %36 = vector.broadcast %cst_25 : f32 to vector<8x16xf32>
    %37 = arith.maximumf %35, %36 : vector<8x16xf32>
    %38 = arith.truncf %37 : vector<8x16xf32> to vector<8x16xbf16>
    %c0_26 = arith.constant 0 : index
    %c0_27 = arith.constant 0 : index
    %39 = vector.load %arg11[%c0_26, %c0_27] : memref<16x128xbf16, #tpu.memory_space<vmem>>, vector<16x128xbf16>
    %cst_28 = arith.constant dense<0.000000e+00> : vector<8x128xf32>
    %40 = tpu.matmul %38, %39, %cst_28 {dimension_numbers = #tpu.dot_dimension_numbers<[1], [0], [0], [1], [0, 0, 1, 1], [], []>} : vector<8x16xbf16>, vector<16x128xbf16>, vector<8x128xf32> -> vector<8x128xf32>
    %c0_29 = arith.constant 0 : index
    %c0_30 = arith.constant 0 : index
    %41 = vector.load %arg12[%c0_29, %c0_30] : memref<1x128xf32, #tpu.memory_space<vmem>>, vector<1x128xf32>
    %42 = vector.broadcast %41 : vector<1x128xf32> to vector<8x128xf32>
    %43 = arith.addf %40, %42 : vector<8x128xf32>
    %cst_31 = arith.constant 0.000000e+00 : f32
    %44 = vector.broadcast %cst_31 : f32 to vector<8x128xf32>
    %45 = arith.maximumf %43, %44 : vector<8x128xf32>
    %c0_32 = arith.constant 0 : index
    %c0_33 = arith.constant 0 : index
    %46 = vector.load %arg13[%c0_32, %c0_33] : memref<8x128xf32, #tpu.memory_space<vmem>>, vector<8x128xf32>
    tpu.vector_store %arg13[%c0_32, %c0_33], %45 {strides = array<i32>} : memref<8x128xf32, #tpu.memory_space<vmem>>, vector<8x128xf32>,
    return
  }
  func.func @transform_0(%arg0: i32) -> (i32, i32) {
    %c0_i32 = arith.constant 0 : i32
    %c0_i32_0 = arith.constant 0 : i32
    return %arg0, %c0_i32 : i32, i32
  }
  func.func @transform_1(%arg0: i32) -> (i32, i32) {
    %c0_i32 = arith.constant 0 : i32
    %c0_i32_0 = arith.constant 0 : i32
    return %arg0, %c0_i32 : i32, i32
  }
  func.func @transform_2(%arg0: i32) -> (i32, i32) {
    %c0_i32 = arith.constant 0 : i32
    %c0_i32_0 = arith.constant 0 : i32
    %c0_i32_1 = arith.constant 0 : i32
    return %c0_i32, %c0_i32_0 : i32, i32
  }
  func.func @transform_3(%arg0: i32) -> (i32, i32) {
    %c0_i32 = arith.constant 0 : i32
    %c0_i32_0 = arith.constant 0 : i32
    %c0_i32_1 = arith.constant 0 : i32
    return %c0_i32, %c0_i32_0 : i32, i32
  }
  func.func @transform_4(%arg0: i32) -> (i32, i32) {
    %c0_i32 = arith.constant 0 : i32
    %c0_i32_0 = arith.constant 0 : i32
    %c0_i32_1 = arith.constant 0 : i32
    return %c0_i32, %c0_i32_0 : i32, i32
  }
  func.func @transform_5(%arg0: i32) -> (i32, i32) {
    %c0_i32 = arith.constant 0 : i32
    %c0_i32_0 = arith.constant 0 : i32
    %c0_i32_1 = arith.constant 0 : i32
    return %c0_i32, %c0_i32_0 : i32, i32
  }
  func.func @transform_6(%arg0: i32) -> (i32, i32) {
    %c0_i32 = arith.constant 0 : i32
    %c0_i32_0 = arith.constant 0 : i32
    %c0_i32_1 = arith.constant 0 : i32
    return %c0_i32, %c0_i32_0 : i32, i32
  }
  func.func @transform_7(%arg0: i32) -> (i32, i32) {
    %c0_i32 = arith.constant 0 : i32
    %c0_i32_0 = arith.constant 0 : i32
    %c0_i32_1 = arith.constant 0 : i32
    return %c0_i32, %c0_i32_0 : i32, i32
  }
  func.func @transform_8(%arg0: i32) -> (i32, i32) {
    %c0_i32 = arith.constant 0 : i32
    %c0_i32_0 = arith.constant 0 : i32
    %c0_i32_1 = arith.constant 0 : i32
    return %c0_i32, %c0_i32_0 : i32, i32
  }
  func.func @transform_9(%arg0: i32) -> (i32, i32) {
    %c0_i32 = arith.constant 0 : i32
    %c0_i32_0 = arith.constant 0 : i32
    %c0_i32_1 = arith.constant 0 : i32
    return %c0_i32, %c0_i32_0 : i32, i32
  }
  func.func @transform_10(%arg0: i32) -> (i32, i32) {
    %c0_i32 = arith.constant 0 : i32
    %c0_i32_0 = arith.constant 0 : i32
    %c0_i32_1 = arith.constant 0 : i32
    return %c0_i32, %c0_i32_0 : i32, i32
  }
  func.func @transform_11(%arg0: i32) -> (i32, i32) {
    %c0_i32 = arith.constant 0 : i32
    %c0_i32_0 = arith.constant 0 : i32
    %c0_i32_1 = arith.constant 0 : i32
    return %c0_i32, %c0_i32_0 : i32, i32
  }
  func.func @transform_12(%arg0: i32) -> (i32, i32) {
    %c0_i32 = arith.constant 0 : i32
    %c0_i32_0 = arith.constant 0 : i32
    return %arg0, %c0_i32 : i32, i32
  }
}

</mosaic_0001>

<bundles_post_ra>
// kernel: pallas_forward.1
= control target key start
LH: loop header
LB: loop body
LE: loop exit
PB: predicated region body
PF: predicated region fallthrough
CT: control target
= control target key end

     0   :  { %vm76_vm0 = vcmask 1040384   ;;  %v532_v0 = vmov 0.0   ;;  %vm533_vm1 = vmmov 0   ;;  %vm159_vm2 = vcmask 261120   ;;  %s534_s27 = smov 96   ;;  %s690_s2 = inlined_call_operand.vmem [shape: bf16[50,64], index: 2, kind: input, shape index: {}]   ;;  %s691_s4 = inlined_call_operand.vmem [shape: bf16[32,32], index: 4, kind: input, shape index: {}]   ;;  %s692_s1 = inlined_call_operand.vmem [shape: f32[8,32], index: 1, kind: input, shape index: {}]   ;;  %s693_s0 = inlined_call_operand.vmem [shape: f32[8,50], index: 0, kind: input, shape index: {}]   ;;  %s694_s6 = inlined_call_operand.vmem [shape: bf16[64,32], index: 6, kind: input, shape index: {}]   ;;  %s695_s5 = inlined_call_operand.vmem [shape: f32[1,32], index: 5, kind: input, shape index: {}]   ;;  %s696_s8 = inlined_call_operand.vmem [shape: bf16[32,16], index: 8, kind: input, shape index: {}]   ;;  %s697_s3 = inlined_call_operand.vmem [shape: f32[1,32], index: 3, kind: input, shape index: {}]   ;;  %s698_s10 = inlined_call_operand.vmem [shape: bf16[16,128], index: 10, kind: input, shape index: {}]   ;;  %s699_s7 = inlined_call_operand.vmem [shape: f32[1,32], index: 7, kind: input, shape index: {}]   ;;  %s700_s9 = inlined_call_operand.vmem [shape: f32[1,16], index: 9, kind: input, shape index: {}]   ;;  %s701_s11 = inlined_call_operand.vmem [shape: f32[1,128], index: 11, kind: input, shape index: {}]   ;;  %s702_s12 = inlined_call_operand.vmem [shape: f32[8,128], index: 12, kind: output, shape index: {}]  }
   0x1   :  { %469 = vmatprep.subr.bf16.mxu0 %v532_v0  ;;  %v519_v1 = vld [vmem:[%s690_s2 + $0x18] ss:$0 sps:$4 sm:$0x11]   ;;  %481 = vmatprep.subr.bf16.mxu1 %v532_v0  ;;  %v521_v3 = vld [vmem:[%s691_s4 + $0x8] sm:$0xff]   ;;  %v520_v4 = vld [vmem:[%s690_s2 + $0x10] sm:$0xff]   ;;  %vm72_vm3 = vcmask 408576  }
   0x2   :  { %485 = vmatprep.mubr.msk.bf16.mxu1 %vm533_vm1, %v532_v0  ;;  %477 = vmatprep.mubr.msk.bf16.mxu0 %vm533_vm1, %v532_v0  ;;  %v78_v2 = vsel %vm76_vm0, %v519_v1, 0  ;;  %v523_v5 = vld [vmem:[%s691_s4] sm:$0xff]   ;;  %v522_v7 = vld [vmem:[%s690_s2 + $0x8] sm:$0xff]   ;;  %v525_v12 = vld [vmem:[%s694_s6 + $0x18] sm:$0xff]   ;;  %vm249_vm4 = vcmask 523264   ;;  %vm378_vm5 = vcmask 130048  }
   0x3   :  { %470 = vmatpush3.bf16.msra.mxu0 %v78_v2  ;;  %482 = vmatpush3.bf16.msra.mxu1 %v521_v3  ;;  %v134_v6 = vld [vmem:[%s692_s1] sm:$0xff]  ;;  %v526_v13 = vld [vmem:[%s694_s6 + $0x10] sm:$0xff]   ;;  %v527_v14 = vld [vmem:[%s694_s6 + $0x8] sm:$0xff]  }
   0x4   :  { %471 = vmatprep.subr.bf16.mxu0 %v532_v0  ;;  %483 = vmatprep.subr.bf16.mxu1 %v532_v0  ;;  %v135_v8 = vpack.c.bf16 %v134_v6, %v134_v6  ;;  %v524_v9 = vld [vmem:[%s690_s2] sm:$0xff]   ;;  %v529_v21 = vld [vmem:[%s696_s8 + $0x8] sm:$0xff]  }
   0x5   :  { %v42_v10 = vld [vmem:[%s693_s0] sm:$0xff] }
   0x6   :  { %v43_v11 = vpack.c.bf16 %v42_v10, %v42_v10  ;;  %v528_v15 = vld [vmem:[%s694_s6] sm:$0xff]   ;;  %s535_s6 = smov 32  }
   0x7   :  { %472 = vmatpush3.bf16.msra.mxu0 %v520_v4  ;;  %484 = vmatpush3.bf16.msra.mxu1 %v523_v5  ;;  %v434_v17 = vld [vmem:[%s695_s5] ss:$0 sm:$0xff] }
   0x8   :  { %473 = vmatprep.subr.bf16.mxu0 %v532_v0  ;;  %489 = vmatprep.subr.bf16.mxu1 %v532_v0  ;;  %v433_v28 = vld [vmem:[%s697_s3] ss:$0 sm:$0xff] }
   0x9   :  { %v530_v36 = vld [vmem:[%s696_s8] sm:$0xff]  }
   0xa   :  { %486 = vmatmul.mubr.msk.bf16.vlgmr.msra.gmra.mxu1 %vm159_vm2, %v135_v8  ;;  %v438_v37 = vld [vmem:[%s699_s7] ss:$0 sm:$0xff] }
   0xb   :  { %474 = vmatpush3.bf16.msra.mxu0 %v522_v7  ;;  %497 = vmatprep.mubr.msk.bf16.mxu1 %vm533_vm1, %v532_v0  ;;  %v531_v43 = vld [vmem:[%s698_s10] sm:$0xff]  }
   0xc   :  { %475 = vmatprep.subr.bf16.mxu0 %v532_v0  ;;  %490 = vmatpush3.bf16.msra.mxu1 %v525_v12  ;;  %v444_v46 = vld [vmem:[%s700_s9] ss:$0 sm:$0xff] }
   0xd   :  { %491 = vmatprep.subr.bf16.mxu1 %v532_v0  ;;  %v448_v54 = vld [vmem:[%s701_s11] ss:$0 sm:$0xff] }
   0xf   :  { %476 = vmatpush3.bf16.msra.mxu0 %v524_v9 }
  0x10   :  { %501 = vmatprep.subr.bf16.mxu0 %v532_v0  ;;  %492 = vmatpush3.bf16.msra.mxu1 %v526_v13 }
  0x11   :  { %493 = vmatprep.subr.bf16.mxu1 %v532_v0 }
  0x12   :  { %478 = vmatmul.mubr.msk.bf16.vlgmr.msra.gmra.mxu0 %vm72_vm3, %v43_v11 }
  0x13   :  { %505 = vmatprep.mubr.msk.bf16.mxu0 %vm533_vm1, %v532_v0  ;;  %502 = vmatpush3.bf16.msra.mxu0 %v529_v21 }
  0x14   :  { %494 = vmatpush3.bf16.msra.mxu1 %v527_v14  ;;  %503 = vmatprep.subr.bf16.mxu0 %v532_v0 }
  0x15   :  { %495 = vmatprep.subr.bf16.mxu1 %v532_v0 }
  0x17   :  { %504 = vmatpush3.bf16.msra.mxu0 %v530_v36 }
  0x18   :  { %496 = vmatpush3.bf16.msra.mxu1 %v528_v15  ;;  %509 = vmatprep.subr.bf16.mxu0 %v532_v0 }
  0xca   :  { %v197_v16 = vpop.f32.mrf.mxu1 }
  0xcb   :  { %v198_v19 = vadd.f32 %v434_v17, %v197_v16 }
  0xcc   :  { %v487_v18 = vpop.f32.mrf.mxu1 }
  0xcd   :  { %v203_v24 = vmax.f32 %v198_v19, 0.0 }
  0xce   :  { %v200_v20 = vpop.f32.mrf.mxu1 }
  0xd0   :  { %v488_v22 = vpop.f32.mrf.mxu1 }
  0xd2   :  { %v114_v23 = vpop.f32.mrf.mxu0 }
  0xd3   :  { %121 = vrot.lane.b32.xlu0 %v114_v23, %s534_s27 }
  0xd4   :  { %v479_v25 = vpop.f32.mrf.mxu0 }
  0xd6   :  { %v117_v26 = vpop.f32.mrf.mxu0 }
  0xd7   :  { %205 = vrot.lane.b32.xlu0 %v203_v24, %s535_s6 }
  0xd8   :  { %v480_v27 = vpop.f32.mrf.mxu0 }
 0x145   :  { %v122_v29 = vpop.permute.xlu0 %121 }
 0x146   :  { %v124_v30 = vmax.f32 %v114_v23, %v122_v29 }
 0x148   :  { %v132_v31 = vadd.f32 %v433_v28, %v124_v30 }
 0x149   :  { %v206_v32 = vpop.permute.xlu0 %205 }
 0x14a   :  { %v133_v33 = vmax.f32 %v132_v31, 0.0 }
 0x14c   :  { %v208_v34 = vsel %vm159_vm2, %v133_v33, %v206_v32 }
 0x14d   :  { %v209_v35 = vpack.c.bf16 %v208_v34, %v208_v34 }
 0x14f   :  { %498 = vmatmul.mubr.msk.bf16.vlgmr.msra.gmra.mxu1 %vm249_vm4, %v209_v35 }
 0x20f   :  { %v287_v38 = vpop.f32.mrf.mxu1 }
 0x210   :  { %v288_v39 = vadd.f32 %v438_v37, %v287_v38 }
 0x211   :  { %v499_v40 = vpop.f32.mrf.mxu1 }
 0x212   :  { %v293_v41 = vmax.f32 %v288_v39, 0.0 }
 0x213   :  { %v290_v42 = vpop.f32.mrf.mxu1 }
 0x214   :  { %v294_v44 = vpack.c.bf16 %v293_v41, %v293_v41 }
 0x215   :  { %v500_v45 = vpop.f32.mrf.mxu1 }
 0x216   :  { %506 = vmatmul.mubr.msk.bf16.vlgmr.msra.gmra.mxu0 %vm159_vm2, %v294_v44 }
 0x217   :  { %510 = vmatpush3.bf16.msra.mxu0 %v531_v43  ;;  %511 = vmatprep.mubr.msk.bf16.mxu0 %vm533_vm1, %v532_v0 }
 0x2d6   :  { %v355_v47 = vpop.f32.mrf.mxu0 }
 0x2d7   :  { %v356_v48 = vadd.f32 %v444_v46, %v355_v47 }
 0x2d8   :  { %v507_v49 = vpop.f32.mrf.mxu0 }
 0x2d9   :  { %v361_v50 = vmax.f32 %v356_v48, 0.0 }
 0x2da   :  { %v358_v51 = vpop.f32.mrf.mxu0 }
 0x2db   :  { %v362_v52 = vpack.c.bf16 %v361_v50, %v361_v50 }
 0x2dc   :  { %v508_v53 = vpop.f32.mrf.mxu0 }
 0x2dd   :  { %512 = vmatmul.mubr.msk.bf16.vlgmr.msra.gmra.mxu0 %vm378_vm5, %v362_v52 }
 0x39d   :  { %v416_v55 = vpop.f32.mrf.mxu0 }
 0x39e   :  { %v417_v56 = vadd.f32 %v448_v54, %v416_v55 }
 0x39f   :  { %v513_v57 = vpop.f32.mrf.mxu0 }
 0x3a0   :  { %v422_v58 = vmax.f32 %v417_v56, 0.0 }
 0x3a1   :  { %v419_v59 = vpop.f32.mrf.mxu0 }
 0x3a2   :  { %423 = vst [vmem:[%s702_s12] sm:$0xff] %v422_v58 }
 0x3a3   :  { %v514_v60 = vpop.f32.mrf.mxu0 }

</bundles_post_ra>
